<compile_context>
chip_gen: v6e
topology: v6e:2x2x1
jax: 0.10.0
libtpu: 0.0.40
codegen_flags: <defaults>
</compile_context>

<pallas_src>
import jax
import jax.numpy as jnp
from jax.experimental import pallas as pl
from jax.experimental.pallas import tpu as pltpu


def _identity_dma_kernel(x_hbm_ref, o_hbm_ref, sem):
    # One whole-array HBM->HBM DMA: no VMEM staging, no vld/vst loop, no grid.
    cp = pltpu.make_async_copy(x_hbm_ref, o_hbm_ref, sem)
    cp.start()
    cp.wait()


def base_model_forward(x: jax.Array) -> jax.Array:
    """Identity forward matching BaseModel's (abstract) forward semantics.

    The fastest identity needs zero data movement: return the input unchanged.
    """
    return x


def base_model_forward_tpu(x: jax.Array) -> jax.Array:
    """TPU-resident identity forward (optional entry point for subclasses).

    Implemented as a single HBM->HBM async copy with memory_space=pl.ANY on
    both sides, so nothing is staged through VMEM and no tiling heuristics
    (tile size / lane alignment / VMEM limits) are needed on v5e/v6e/v7x.
    """
    orig_shape = x.shape
    if x.size == 0:
        return x  # nothing to copy
    if x.ndim == 0:
        x2 = x.reshape(1, 1)
    elif x.ndim == 1:
        x2 = x.reshape(1, -1)
    else:
        x2 = x

    out = pl.pallas_call(
        _identity_dma_kernel,
        out_shape=jax.ShapeDtypeStruct(x2.shape, x2.dtype),
        in_specs=[pl.BlockSpec(memory_space=pl.ANY)],    # leave input in HBM
        out_specs=pl.BlockSpec(memory_space=pl.ANY),     # write output in HBM
        scratch_shapes=[pltpu.SemaphoreType.DMA(())],
    )(x2)
    return out.reshape(orig_shape)


class BaseModelPallas:
    """JAX/Pallas analogue of pytorch_mrc BaseModel (abstract base class)."""

    def __init__(self, vocab=None):
        self.vocab = vocab
        self.ema_decay = 0
        self.training = False
        self.optimizer = None

    def forward(self, x):
        # TODO(synk): BaseModel.forward raises NotImplementedError in PyTorch;
        # there is no concrete compute to translate, so the faithful (and
        # zero-cost) forward is an identity pass-through with no kernel.
        return base_model_forward(x)

    def __call__(self, x):
        return self.forward(x)

    def update(self):
        if not self.training:
            raise Exception("Only in the train mode, you can update the weights")
        if self.optimizer is None:
            raise Exception("The model need to compile!")

    # load/save/compile/train_and_evaluate/evaluate/inference/get_best_answer
    # are checkpoint / training-loop glue with no tensor compute: no kernel.
    def load(self, path, var_list=None):
        pass

    def save(self, path, global_step=None, var_list=None):
        pass


if __name__ == "__main__":
    key = jax.random.PRNGKey(0)
    k1, k2 = jax.random.split(key)

    model = BaseModelPallas(vocab=None)

    # Small shape implied by the (abstract) MRC model: [batch*seq, hidden].
    batch, seq, hidden = 2, 8, 32
    x = jax.random.normal(k1, (batch * seq, hidden), dtype=jnp.float32)
    x_host = jax.device_get(x)

    # Default forward: no kernel, no HBM traffic.
    y = jax.block_until_ready(model(x))
    assert y.shape == x_host.shape and y.dtype == x_host.dtype
    assert (jax.device_get(y) == x_host).all(), "identity forward mismatch"

    # TPU-resident Pallas identity (single HBM->HBM DMA), run once and verified.
    y_tpu = jax.block_until_ready(base_model_forward_tpu(x))
    assert y_tpu.shape == x_host.shape and y_tpu.dtype == x_host.dtype
    assert (jax.device_get(y_tpu) == x_host).all(), "DMA identity mismatch"

    # Lane-aligned, larger 2-D shape exercising the same whole-array DMA path.
    x_wide = jax.random.normal(k2, (256, 256), dtype=jnp.float32)
    xw_host = jax.device_get(x_wide)
    y_wide = jax.block_until_ready(base_model_forward_tpu(x_wide))
    assert (jax.device_get(y_wide) == xw_host).all(), "DMA identity mismatch (wide)"

    print("KERNEL_OK")
</pallas_src>

<mosaic_0001>
module attributes {stable_mosaic.version = 11 : i64} {
  func.func @_identity_dma_kernel(%arg0: memref<16x32xf32, #tpu.memory_space<any>>, %arg1: memref<16x32xf32, #tpu.memory_space<any>>, %arg2: memref<!tpu.dma_semaphore, #tpu.memory_space<semaphore_mem>>) attributes {dimension_semantics = [], scalar_prefetch = 0 : i64, scratch_operands = 1 : i64, tpu.core_type = #tpu.core_type<tc>} {
    tpu.enqueue_dma source(%arg0 : memref<16x32xf32, #tpu.memory_space<any>>) target(%arg1 : memref<16x32xf32, #tpu.memory_space<any>>) target_semaphore(%arg2 : memref<!tpu.dma_semaphore, #tpu.memory_space<semaphore_mem>>)
    tpu.wait_dma2 semaphore(%arg2 : memref<!tpu.dma_semaphore, #tpu.memory_space<semaphore_mem>>) src(%arg0 : memref<16x32xf32, #tpu.memory_space<any>>) dst(%arg1 : memref<16x32xf32, #tpu.memory_space<any>>)
    return
  }
}

</mosaic_0001>

<bundles_post_ra>
// kernel: tpu_custom_call.1
= control target key start
LH: loop header
LB: loop body
LE: loop exit
PB: predicated region body
PF: predicated region fallthrough
CT: control target
= control target key end

     0   :  { %s28_s6 = smov [#allocation2]   ;;  %s29_s7 = smov 131072   ;;  %s47_s0 = inlined_call_operand.hbm [shape: f32[16,32], index: 0, kind: input, shape index: {}]   ;;  %s48_s1 = inlined_call_operand.hbm [shape: f32[16,32], index: 1, kind: output, shape index: {}]  }
   0x1   :  { %s30_s8 = smov 0  }
   0x2   :  { %12 = dma.general %s47_s0, 256, %s48_s1, %s28_s6, %s29_s7, [#allocation4], %s30_s8, 0  }
   0x3   :  { %26 = dma.done.wait [#allocation2], 256 }
   0x4   :  { %27 = vsyncadd [#allocation2], 4294967040 }
   0x5   :  { %16 = vsyncmov [#allocation2] }
   0x8   :  { %s17_s13 = vpop.sfrf %16 }
   0x9   :  { %p22_p0 = scmp.ne.s32.totalorder %s17_s13, 0 }
   0xb   :  { %21 = shalt.err (%p22_p0)  }

</bundles_post_ra>
